<compile_context>
chip_gen: v5e
topology: v5e:2x2
jax: 0.10.0
libtpu: 0.0.40
codegen_flags: <defaults>
</compile_context>

<pallas_src>
import functools

import jax
import jax.numpy as jnp
from jax.experimental import pallas as pl
from jax.experimental.pallas import tpu as pltpu

_MIB = 1024 * 1024


def _vmem_capacity_bytes(default=64 * _MIB):
    """Physical per-core VMEM; conservative (v7x-sized) default if unknown."""
    try:
        info = pltpu.get_tpu_info()
    except Exception:
        return default
    for name in ("vmem_capacity_bytes", "vmem_bytes", "vmem_size_bytes"):
        v = getattr(info, name, None)
        if v:
            try:
                return int(v)
            except (TypeError, ValueError):
                pass
    return default


def _round_up(x, m):
    return -(-x // m) * m


def _choose_bm(M, K, in_item, out_item, budget_bytes):
    """Rows per block, sized against what VMEM actually allocates:

      * input tile : lane-padded width ceil(K/128)*128, double-buffered
      * output tile: (1, bm) row pads 1 -> 8 sublanes, double-buffered
      * ~2 block-sized f32 temporaries for the clamp / pow working set
    """
    k_pad = _round_up(K, 128)
    per_row = 2 * k_pad * in_item + 2 * 8 * out_item + 2 * k_pad * 4
    bm = max(128, (budget_bytes // per_row) // 128 * 128)
    if bm >= M:
        if M <= 512:
            return M  # one tiny full-dim block (legal for any M)
        # Whole problem fits in one block: split into ~4 steps anyway so the
        # DMA pipeline has depth and both v7x TensorCores get >= 2 steps.
        bm = max(128, _round_up(-(-M // 4), 128))
    return bm


def _gmp_kernel_static(x_ref, o_ref, *, eps, p):
    # x_ref: (bm, K) VMEM tile; o_ref: (1, bm) lane-dense VMEM row.
    # Static p: per-element work is VPU-only (integer pow); one root per row.
    x = jnp.maximum(x_ref[...].astype(jnp.float32), eps)       # clamp(min=eps)
    p = float(p)
    if p == round(p) and p > 0:
        xp = x ** int(round(p))        # lax.integer_pow -> VPU multiplies only
    else:
        xp = x ** p
    m = jnp.mean(xp, axis=-1)                                   # (bm,)
    r = m ** (1.0 / p)                                          # root, per row
    o_ref[0, :] = r.astype(o_ref.dtype)


def _gmp_kernel_traced(p_ref, x_ref, o_ref, *, eps):
    # p_ref: scalar-prefetch SMEM ref, shape (1,); learned exponent, p > 0.
    # Traced p is EUP-bound (log+exp per element); prefer the static path
    # whenever p is known at trace time.
    p = p_ref[0]
    x = jnp.maximum(x_ref[...].astype(jnp.float32), eps)        # x >= eps > 0
    xp = jnp.exp(p * jnp.log(x))                                 # x ** p
    m = jnp.mean(xp, axis=-1)                                    # (bm,)
    r = jnp.exp(jnp.log(m) / p)                                  # m ** (1/p)
    o_ref[0, :] = r.astype(o_ref.dtype)


def generalized_mean_pooling(x, p, *, eps=1e-6):
    """GeM pooling (global, output_size=1).

    x : (N, C, H, W)
    p : learned exponent; a JAX scalar / shape-(1,) array (traced path) or a
        Python number (static fast path, e.g. the default norm=3). Must be > 0.
    Returns (N, C, 1, 1) in x.dtype.
    """
    # TODO(synk): only output_size == 1 (global GeM) is implemented; general
    # adaptive_avg_pool2d output sizes are not.
    N, C, H, W = x.shape
    M, K = N * C, H * W
    x2 = x.reshape(M, K)

    in_item = x2.dtype.itemsize
    out_dtype = x.dtype
    out_item = jnp.dtype(out_dtype).itemsize

    vmem_cap = _vmem_capacity_bytes()
    vmem_limit = int(min(vmem_cap * 3 // 4, 112 * _MIB))  # explicit scoped limit
    block_budget = int(min(vmem_cap // 2, 48 * _MIB))     # what _choose_bm targets

    bm = _choose_bm(M, K, in_item, out_item, block_budget)
    grid = (pl.cdiv(M, bm),)
    num_blocks = grid[0]

    # TODO(synk): for K < 128 a g=128//K row-packing view would restore lane
    # utilization on v7x; typical GeM feature maps here have K >= 128.
    x_spec = pl.BlockSpec((bm, K), lambda i, *_: (i, 0))
    # Lane-dense output: each step writes one (1, bm) row of a single long row.
    o_spec = pl.BlockSpec((1, bm), lambda i, *_: (0, i))
    out_shape = jax.ShapeDtypeStruct((1, num_blocks * bm), out_dtype)

    is_static_p = isinstance(p, (int, float))
    cost = pl.CostEstimate(
        flops=4 * M * K,
        transcendentals=(2 * M * K + 2 * M) if not is_static_p else 2 * M,
        bytes_accessed=M * K * in_item + M * out_item,
    )

    if is_static_p:
        kernel = functools.partial(_gmp_kernel_static, eps=float(eps), p=float(p))
        grid_spec = pltpu.PrefetchScalarGridSpec(
            num_scalar_prefetch=0, grid=grid,
            in_specs=[x_spec], out_specs=o_spec)
        args = (x2,)
    else:
        kernel = functools.partial(_gmp_kernel_traced, eps=float(eps))
        p_arr = jnp.asarray(p, dtype=jnp.float32).reshape(1)
        grid_spec = pltpu.PrefetchScalarGridSpec(
            num_scalar_prefetch=1, grid=grid,
            in_specs=[x_spec], out_specs=o_spec)
        args = (p_arr, x2)

    out = pl.pallas_call(
        kernel,
        out_shape=out_shape,
        grid_spec=grid_spec,
        compiler_params=pltpu.CompilerParams(
            dimension_semantics=("parallel",),
            vmem_limit_bytes=vmem_limit,
        ),
        cost_estimate=cost,
    )(*args)

    # Columns corresponding to rows >= M (partial trailing block) hold garbage;
    # they are sliced off here and never asserted on.
    return out.reshape(-1)[:M].reshape(N, C, 1, 1)


if __name__ == "__main__":
    # Deterministic parameter init, mirroring nn.Parameter(torch.ones(1) * norm)
    norm = 3.0
    eps = 1e-6
    p_param = jnp.ones((1,), dtype=jnp.float32) * norm

    key = jax.random.PRNGKey(0)
    x = jax.random.normal(key, (2, 4, 16, 16), dtype=jnp.float32)

    # Traced-p path (matches the nn.Parameter semantics).
    y = jax.block_until_ready(generalized_mean_pooling(x, p_param, eps=eps))
    ref = jnp.mean(jnp.maximum(x, eps) ** p_param[0], axis=(2, 3),
                   keepdims=True) ** (1.0 / p_param[0])
    assert y.shape == (2, 4, 1, 1)
    assert jnp.allclose(y, ref, rtol=1e-4, atol=1e-6)

    # Static-p fast path (VPU-only per-element pow for the common p=3 case).
    y_s = jax.block_until_ready(generalized_mean_pooling(x, 3.0, eps=eps))
    ref_s = jnp.mean(jnp.maximum(x, eps) ** 3, axis=(2, 3),
                     keepdims=True) ** (1.0 / 3.0)
    assert jnp.allclose(y_s, ref_s, rtol=1e-4, atol=1e-6)

    print("KERNEL_OK")
</pallas_src>

<mosaic_0001>
module attributes {stable_mosaic.version = 11 : i64} {
  func.func @_gmp_kernel_traced(%arg0: i32, %arg1: memref<1xf32, #tpu.memory_space<smem>>, %arg2: memref<8x256xf32, #tpu.memory_space<vmem>>, %arg3: memref<1x8xf32, #tpu.memory_space<vmem>>) attributes {dimension_semantics = [#tpu.dimension_semantics<parallel>], iteration_bounds = array<i64: 1>, scalar_prefetch = 1 : i64, scratch_operands = 0 : i64, tpu.core_type = #tpu.core_type<tc>, window_params = [{transform_indices = @transform_0, window_bounds = array<i64: 8, 256>}, {transform_indices = @transform_1, window_bounds = array<i64: 1, 8>}]} {
    %c0 = arith.constant 0 : index
    %0 = memref.load %arg1[%c0] : memref<1xf32, #tpu.memory_space<smem>>
    %c0_0 = arith.constant 0 : index
    %c0_1 = arith.constant 0 : index
    %1 = vector.load %arg2[%c0_0, %c0_1] : memref<8x256xf32, #tpu.memory_space<vmem>>, vector<8x256xf32>
    %cst = arith.constant 9.99999997E-7 : f32
    %2 = vector.broadcast %cst : f32 to vector<8x256xf32>
    %3 = arith.maximumf %1, %2 : vector<8x256xf32>
    %4 = math.log %3 : vector<8x256xf32>
    %5 = vector.broadcast %0 : f32 to vector<8x256xf32>
    %6 = arith.mulf %5, %4 : vector<8x256xf32>
    %7 = math.exp %6 : vector<8x256xf32>
    %cst_2 = arith.constant dense<0.000000e+00> : vector<8xf32>
    %8 = vector.multi_reduction <add>, %7, %cst_2 [1] : vector<8x256xf32> to vector<8xf32>
    %cst_3 = arith.constant 2.560000e+02 : f32
    %9 = vector.broadcast %cst_3 : f32 to vector<8xf32>
    %10 = arith.divf %8, %9 : vector<8xf32>
    %11 = math.log %10 : vector<8xf32>
    %12 = vector.broadcast %0 : f32 to vector<8xf32>
    %13 = arith.divf %11, %12 : vector<8xf32>
    %14 = math.exp %13 : vector<8xf32>
    %c0_4 = arith.constant 0 : index
    %c0_5 = arith.constant 0 : index
    %15 = vector.load %arg3[%c0_4, %c0_5] : memref<1x8xf32, #tpu.memory_space<vmem>>, vector<1x8xf32>
    %16 = vector.shape_cast %15 : vector<1x8xf32> to vector<8xf32>
    %17 = vector.shape_cast %14 : vector<8xf32> to vector<1x8xf32>
    tpu.vector_store %arg3[%c0_4, %c0_5], %17 {strides = array<i32>} : memref<1x8xf32, #tpu.memory_space<vmem>>, vector<1x8xf32>,
    return
  }
  func.func @transform_0(%arg0: i32, %arg1: memref<1xf32, #tpu.memory_space<smem>>) -> (i32, i32) {
    %c0_i32 = arith.constant 0 : i32
    %c0_i32_0 = arith.constant 0 : i32
    return %arg0, %c0_i32 : i32, i32
  }
  func.func @transform_1(%arg0: i32, %arg1: memref<1xf32, #tpu.memory_space<smem>>) -> (i32, i32) {
    %c0_i32 = arith.constant 0 : i32
    %c0_i32_0 = arith.constant 0 : i32
    return %c0_i32, %arg0 : i32, i32
  }
}

</mosaic_0001>

<bundles_post_ra>
// kernel: tpu_custom_call.1
= control target key start
LH: loop header
LB: loop body
LE: loop exit
PB: predicated region body
PF: predicated region fallthrough
CT: control target
= control target key end

     0   :  { %8 = vsyncpa [#allocation5], 0  ;;  %s193_s0 = inlined_call_operand.<no memory space> [shape: f32[1], index: 0, kind: input, shape index: {}]   ;;  %s194_s1 = inlined_call_operand.hbm [shape: f32[8,256], index: 1, kind: input, shape index: {}]   ;;  %s195_s2 = inlined_call_operand.hbm [shape: f32[1,8], index: 2, kind: output, shape index: {}]  }
   0x1   :  { %9 = vsyncpa [#allocation6], 0  ;;  %s15_s11 = sshll.u32 %s194_s1, 4  ;;  %s166_s12 = smov [#allocation4]   ;;  %s16_s11 = int_to_ptr.hbm [resolvable:$true] %s15_s11 }
   0x2   :  { %s17_s13 = sshll.u32 %s166_s12, 4  ;;  %s18_s13 = int_to_ptr.vmem [resolvable:$true] %s17_s13 }
   0x3   :  { %20 = dma.hbm_to_vmem [thread:$0]  %s16_s11, 256, %s18_s13, [#allocation5]  }
   0x4   :  { %162 = dma.done.wait [#allocation5], 256  }
   0x5   :  { %163 = vsyncadd [#allocation5], 4294967040  ;;  %v26_v0 = vld [vmem:[#allocation4] sm:$0xff]  ;;  %v27_v1 = vld [vmem:[#allocation4 + $0x8] sm:$0xff]  ;;  %v34_v5 = vstv %s193_s0  ;;  %v167_v16 = vmov 256.0   ;;  %v72_v39 = vlaneseq  ;;  %s168_s0 = smov [#allocation7]  }
   0x6   :  { %v28_v2 = vmax.f32 %v26_v0, 1e-06  ;;  %v29_v3 = vmax.f32 %v27_v1, 1e-06  ;;  %vm59_vm1 = vweird.f32 %v34_v5  ;;  %v65_v29 = vand.u32 2147483648, %v34_v5  ;;  %s83_s1 = sshll.u32 %s168_s0, 4  ;;  %s84_s1 = int_to_ptr.vmem [resolvable:$true] %s83_s1 }
   0x7   :  { %v63_v31 = vand.u32 2147483647, %v34_v5  ;;  %v73_v40 = vand.u32 127, %v72_v39  ;;  %s85_s18 = sshll.u32 %s195_s2, 4  ;;  %vm76_vm5 = vcmask 57344   ;;  %s86_s18 = int_to_ptr.hbm [resolvable:$true] %s85_s18 }
   0x8   :  { %98 = vlog2.f32 %v28_v2  ;;  %v66_v32 = vor.u32 1.1754944e-38, %v65_v29 }
   0x9   :  { %100 = vlog2.f32 %v29_v3  ;;  %vm64_vm4 = vcmp.eq.f32.partialorder %v63_v31, 8.507059e+37 }
   0xe   :  { %v99_v4 = vpop.eup %98 }
   0xf   :  { %v101_v6 = vpop.eup %100  ;;  %v31_v7 = vmul.f32 0.6931472, %v99_v4 }
  0x10   :  { %v33_v8 = vmul.f32 0.6931472, %v101_v6 }
  0x11   :  { %v35_v9 = vmul.f32 %v34_v5, %v31_v7 }
  0x12   :  { %v36_v10 = vmul.f32 %v34_v5, %v33_v8 }
  0x13   :  { %v37_v11 = vmul.f32 1.442695, %v35_v9 }
  0x14   :  { %v39_v12 = vmul.f32 1.442695, %v36_v10 }
  0x15   :  { %102 = vpow2.f32 %v37_v11 }
  0x16   :  { %104 = vpow2.f32 %v39_v12 }
  0x17   :  { %106 = vrcp.f32 %v167_v16 }
  0x18   :  { %108 = vrcp.f32 %v34_v5 }
  0x1b   :  { %v103_v13 = vpop.eup %102 }
  0x1c   :  { %v105_v14 = vpop.eup %104 }
  0x1d   :  { %v41_v15 = vadd.f32 %v105_v14, %v103_v13  ;;  %v107_v17 = vpop.eup %106 }
  0x1e   :  { %v45_v18 = vmul.f32 256.0, %v107_v17  ;;  %v109_v20 = vpop.eup %108  ;;  %vm49_vm0 = vweird.f32 %v107_v17 }
  0x1f   :  { %42 = vadd.xlane.f32.xlu0 %v41_v15  ;;  %v55_v22 = vmul.f32 %v109_v20, %v34_v5  ;;  %vm60_vm2 = vweird.f32 %v109_v20 }
  0x20   :  { %v46_v19 = vsub.f32 1.0, %v45_v18  ;;  %vm61_vm3 = vmor %vm59_vm1, %vm60_vm2 }
  0x21   :  { %v56_v24 = vsub.f32 1.0, %v55_v22 }
  0x22   :  { %v47_v21 = vmul.f32 %v107_v17, %v46_v19 }
  0x23   :  { %v57_v26 = vmul.f32 %v109_v20, %v56_v24 }
  0x24   :  { %v48_v23 = vadd.f32 %v107_v17, %v47_v21 }
  0x25   :  { %v58_v30 = vadd.f32 %v109_v20, %v57_v26 }
  0x26   :  { %v50_v25 = vsel %vm49_vm0, %v107_v17, %v48_v23 }
  0x27   :  { %v62_v33 = vsel %vm61_vm3, %v109_v20, %v58_v30 }
  0x28   :  { %v67_v35 = vsel %vm64_vm4, %v66_v32, %v62_v33 }
  0x92   :  { %v43_v27 = vpop.xlane.xlu0 %42 }
  0x93   :  { %v51_v28 = vmul.f32 %v50_v25, %v43_v27 }
  0x95   :  { %110 = vlog2.f32 %v51_v28 }
  0x9b   :  { %v111_v34 = vpop.eup %110 }
  0x9c   :  { %v53_v36 = vmul.f32 0.6931472, %v111_v34 }
  0x9e   :  { %v68_v37 = vmul.f32 %v67_v35, %v53_v36 }
  0xa0   :  { %v69_v38 = vmul.f32 1.442695, %v68_v37 }
  0xa2   :  { %112 = vpow2.f32 %v69_v38 }
  0xa8   :  { %v113_v41 = vpop.eup %112 }
  0xa9   :  { %v74_v42 = vperm.slane %v113_v41, %v73_v40 }
  0xab   :  { %77 = vst.msk [vmem:[#allocation7] sm:$0x1] %vm76_vm5, %v74_v42 }
  0xac   :  { %88 = dma.vmem_to_hbm [thread:$0]  %s84_s1, 16, %s86_s18, [#allocation6]  }
  0xad   :  { %164 = dma.done.wait [#allocation6], 16  }
  0xae   :  { %165 = vsyncadd [#allocation6], 4294967280 }
  0xaf   :  { %93 = vsyncpa [#allocation5], 1 }
  0xb0   :  { %94 = vsyncpa [#allocation6], 1 }

</bundles_post_ra>
